<compile_context>
chip_gen: v5e
topology: v5e:2x2
jax: 0.10.0
libtpu: 0.0.40
codegen_flags: <defaults>
</compile_context>

<pallas_src>
import numpy as np
import jax
import jax.numpy as jnp
from jax.experimental import pallas as pl
from jax.experimental.pallas import tpu as pltpu

# ----------------------------- config ---------------------------------------
N_NODES = 8
LATENT = 8                   # must equal N_NODES (module shape constraint)
HIDDEN = 32
NUISANCE = 4
N_DEC_LAYERS = 2
N2 = N_NODES * N_NODES       # 64
W_PACK = N_DEC_LAYERS * N2   # 128 : packed lane width (outer products + output)
BATCH = 2


# ----------------------------- kernel ---------------------------------------
def inv_vae_kernel(
    x_ref, c_ref, eps_ref,
    enc_w_ref, enc_b_ref,
    mulv_w_ref, mulv_b_ref,
    dec_wz_ref, dec_wc_ref, dec_b_ref,
    gc_w_ref, gc_b_ref,
    s_rep_ref, s_til_ref,
    fc_w_ref, bias_ref, p_ml_ref,
    out_ref,
):
    x = x_ref[...]                                              # (B, N2)

    # ---- encode: relu(encoder(x));  enc_drop(p=0.0) == identity ----
    h = jnp.dot(x, enc_w_ref[...], preferred_element_type=jnp.float32)
    h = jnp.maximum(h + enc_b_ref[...], 0.0)                    # (B, HIDDEN)

    # ---- fused mu || logvar matmul, lane-slice the halves ----
    ml = jnp.dot(h, mulv_w_ref[...],
                 preferred_element_type=jnp.float32) + mulv_b_ref[...]   # (B, 2L)
    mu = ml[:, :LATENT]
    logvar = ml[:, LATENT:]

    # ---- reparameterize ----
    z = mu + eps_ref[...] * jnp.exp(0.5 * logvar)               # (B, LATENT)

    # ---- decode: both layers fused; no [z, c] lane concat ----
    d_pre = (jnp.dot(z, dec_wz_ref[...], preferred_element_type=jnp.float32)
             + jnp.dot(c_ref[...], dec_wc_ref[...], preferred_element_type=jnp.float32)
             + dec_b_ref[...])
    d = jax.nn.sigmoid(d_pre)                                   # (B, 2N) = [d0 | d1]

    g = jax.nn.sigmoid(
        jnp.dot(d, gc_w_ref[...], preferred_element_type=jnp.float32)
        + gc_b_ref[...])                                        # (B, 2N) = [g0 | g1]

    # ---- per-layer flattened outer products via MXU selector matmuls ----
    # lanes [i*N2 : (i+1)*N2] of `prod` == W[i] * vec(g_i ⊗ g_i)
    prod = (jnp.dot(g, s_rep_ref[...], preferred_element_type=jnp.float32)
            * jnp.dot(g, s_til_ref[...], preferred_element_type=jnp.float32))  # (B, W_PACK)

    # ---- layer-sum + global bias + fc, all folded into one matmul ----
    # lanes 0..N2-1 hold fc(sum_i W[i]*outer_i + b); lanes N2.. are zero.
    out_full = jnp.dot(prod, fc_w_ref[...],
                       preferred_element_type=jnp.float32) + bias_ref[...]     # (B, W_PACK)

    # ---- pack mu||logvar into lanes [N2 : N2+2L] via a tiny placement matmul ----
    ml_placed = jnp.dot(ml, p_ml_ref[...], preferred_element_type=jnp.float32)  # (B, W_PACK)

    lane = jax.lax.broadcasted_iota(jnp.int32, out_full.shape, 1)
    out_ref[...] = jnp.where(lane < N2, jnp.exp(out_full), ml_placed)


# --------------------- host-side fusion of parameters ------------------------
def prepare_kernel_params(p):
    N, L = N_NODES, N_DEC_LAYERS

    # fused mu || logvar head
    mulv_w = jnp.concatenate([p["mu_w"], p["lv_w"]], axis=1)          # (HIDDEN, 2L)
    mulv_b = jnp.concatenate([p["mu_b"], p["lv_b"]], axis=1)          # (1, 2L)

    # decoder layers fused along the output dim, split into z / c parts
    dec_w_full = jnp.concatenate([p["dec_w"][i] for i in range(L)], axis=1)  # (L_in, L*N)
    dec_wz = dec_w_full[:LATENT, :]                                   # (LATENT, L*N)
    dec_wc = dec_w_full[LATENT:, :]                                   # (NUISANCE, L*N)
    dec_b = jnp.concatenate([p["dec_b"][i] for i in range(L)], axis=0)[None, :]

    # block-diagonal graph-conv weight (both layers in one matmul)
    gc_bd = jax.scipy.linalg.block_diag(*[p["gc_w"][i] for i in range(L)])   # (L*N, L*N)
    gc_b = jnp.concatenate([p["gc_b"][i] for i in range(L)], axis=0)[None, :]

    # constant selector matrices for the flattened outer product
    rep_base = np.repeat(np.eye(N, dtype=np.float32), N, axis=1)      # (N, N2) col p*N+q -> row p
    til_base = np.tile(np.eye(N, dtype=np.float32), (1, N))           # (N, N2) col p*N+q -> row q
    # fold the per-layer mix weights W into the "repeat" selector
    s_rep = jax.scipy.linalg.block_diag(
        *[rep_base * p["wmix"][0, i] for i in range(L)])              # (L*N, W_PACK)
    s_til = jnp.asarray(jax.scipy.linalg.block_diag(*([til_base] * L)))  # (L*N, W_PACK)

    # fc weight stacked per layer (folds the layer sum into the fc matmul),
    # zero-padded to the packed output width
    fc_top = jnp.concatenate(
        [p["fc_w"], jnp.zeros((N2, W_PACK - N2), jnp.float32)], axis=1)      # (N2, W_PACK)
    fc_w_ext = jnp.concatenate([fc_top] * L, axis=0)                  # (L*N2, W_PACK)

    # fold b.expand(...) through fc: (acc + b) @ fc_w + fc_b == acc @ fc_w + bias
    fused_bias = p["bglob"] @ p["fc_w"] + p["fc_b"]                   # (1, N2)
    bias_ext = jnp.concatenate(
        [fused_bias, jnp.zeros((1, W_PACK - N2), jnp.float32)], axis=1)      # (1, W_PACK)

    # placement matrix: mu||logvar -> lanes [N2 : N2 + 2*LATENT] of the packed output
    p_ml = np.zeros((2 * LATENT, W_PACK), np.float32)
    p_ml[:, N2:N2 + 2 * LATENT] = np.eye(2 * LATENT, dtype=np.float32)
    p_ml = jnp.asarray(p_ml)

    return (p["enc_w"], p["enc_b"], mulv_w, mulv_b,
            dec_wz, dec_wc, dec_b, gc_bd, gc_b,
            s_rep, s_til, fc_w_ext, bias_ext, p_ml)


# ----------------------------- wrapper ---------------------------------------
def inv_vae_forward(x, c, eps, params):
    B = x.shape[0]
    x_flat = x.reshape(B, N2)

    fused = prepare_kernel_params(params)
    inputs = (x_flat, c, eps) + fused

    vmem_spec = lambda: pl.BlockSpec(memory_space=pltpu.MemorySpace.VMEM)

    # TODO(synk): if batch ever scales beyond toy size, add a grid over the
    # batch axis with dimension_semantics=("parallel",) (2 TCs on v7x) and keep
    # the weights resident via index_map lambda i: (0, 0).
    packed = pl.pallas_call(
        inv_vae_kernel,
        out_shape=jax.ShapeDtypeStruct((B, W_PACK), jnp.float32),     # lane-dense slab
        in_specs=[vmem_spec() for _ in inputs],
        out_specs=vmem_spec(),
    )(*inputs)

    x_out = packed[:, :N2]
    mu = packed[:, N2:N2 + LATENT]
    logvar = packed[:, N2 + LATENT:N2 + 2 * LATENT]
    return x_out, mu, logvar


# ------------------------ deterministic parameters ---------------------------
def init_params(key):
    ks = jax.random.split(key, 16)

    def linear(kw, kb, fan_in, fan_out):
        bound = 1.0 / np.sqrt(fan_in)
        w = jax.random.uniform(kw, (fan_in, fan_out), jnp.float32, -bound, bound)
        b = jax.random.uniform(kb, (1, fan_out), jnp.float32, -bound, bound)
        return w, b

    enc_w, enc_b = linear(ks[0], ks[1], N2, HIDDEN)
    mu_w, mu_b = linear(ks[2], ks[3], HIDDEN, LATENT)
    lv_w, lv_b = linear(ks[4], ks[5], HIDDEN, LATENT)

    dec_in = LATENT + NUISANCE
    dbound = 1.0 / np.sqrt(dec_in)
    dec_w = jax.random.uniform(ks[6], (N_DEC_LAYERS, dec_in, N_NODES),
                               jnp.float32, -dbound, dbound)
    dec_b = jax.random.uniform(ks[7], (N_DEC_LAYERS, N_NODES),
                               jnp.float32, -dbound, dbound)

    gbound = 1.0 / np.sqrt(N_NODES)
    gc_w = jax.random.uniform(ks[8], (N_DEC_LAYERS, N_NODES, N_NODES),
                              jnp.float32, -gbound, gbound)
    gc_b = jax.random.uniform(ks[9], (N_DEC_LAYERS, N_NODES),
                              jnp.float32, -gbound, gbound)

    wmix = jax.random.normal(ks[10], (1, N_DEC_LAYERS), jnp.float32)   # self.W
    bglob = jax.random.normal(ks[11], (1, N2), jnp.float32)            # self.b

    fc_w, fc_b = linear(ks[12], ks[13], N2, N2)

    return dict(enc_w=enc_w, enc_b=enc_b, mu_w=mu_w, mu_b=mu_b,
                lv_w=lv_w, lv_b=lv_b, dec_w=dec_w, dec_b=dec_b,
                gc_w=gc_w, gc_b=gc_b, wmix=wmix, bglob=bglob,
                fc_w=fc_w, fc_b=fc_b)


# --------------------------- pure-JAX reference -------------------------------
def ref_forward(x, c, eps, p):
    B = x.shape[0]
    xf = x.reshape(B, N2)
    h = jax.nn.relu(xf @ p["enc_w"] + p["enc_b"])
    mu = h @ p["mu_w"] + p["mu_b"]
    logvar = h @ p["lv_w"] + p["lv_b"]
    z = mu + eps * jnp.exp(0.5 * logvar)
    zc = jnp.concatenate([z, c], axis=-1)
    acc = jnp.zeros((B, N2), jnp.float32)
    for i in range(N_DEC_LAYERS):
        d = jax.nn.sigmoid(zc @ p["dec_w"][i] + p["dec_b"][i])
        g = jax.nn.sigmoid(d @ p["gc_w"][i] + p["gc_b"][i])
        outer = (g[:, :, None] * g[:, None, :]).reshape(B, N2)
        acc = acc + outer * p["wmix"][0, i]
    pre = acc + p["bglob"]
    xout = jnp.exp(pre @ p["fc_w"] + p["fc_b"])
    return xout, mu, logvar


# -------------------------------- main ----------------------------------------
if __name__ == "__main__":
    key = jax.random.PRNGKey(0)
    kx, kc, keps, kparam = jax.random.split(key, 4)

    x = jax.random.normal(kx, (BATCH, N_NODES, N_NODES), jnp.float32)
    c = jax.random.normal(kc, (BATCH, NUISANCE), jnp.float32)
    eps = jax.random.normal(keps, (BATCH, LATENT), jnp.float32)
    params = init_params(kparam)

    x_out, mu, logvar = inv_vae_forward(x, c, eps, params)
    jax.block_until_ready((x_out, mu, logvar))

    x_ref, mu_ref, lv_ref = ref_forward(x, c, eps, params)
    assert np.allclose(np.asarray(x_out), np.asarray(x_ref), rtol=1e-4, atol=1e-4)
    assert np.allclose(np.asarray(mu), np.asarray(mu_ref), rtol=1e-4, atol=1e-4)
    assert np.allclose(np.asarray(logvar), np.asarray(lv_ref), rtol=1e-4, atol=1e-4)

    print("KERNEL_OK")
</pallas_src>

<mosaic_0001>
module attributes {stable_mosaic.version = 11 : i64} {
  func.func @inv_vae_kernel(%arg0: memref<2x64xf32, #tpu.memory_space<vmem>>, %arg1: memref<2x4xf32, #tpu.memory_space<vmem>>, %arg2: memref<2x8xf32, #tpu.memory_space<vmem>>, %arg3: memref<64x32xf32, #tpu.memory_space<vmem>>, %arg4: memref<1x32xf32, #tpu.memory_space<vmem>>, %arg5: memref<32x16xf32, #tpu.memory_space<vmem>>, %arg6: memref<1x16xf32, #tpu.memory_space<vmem>>, %arg7: memref<8x16xf32, #tpu.memory_space<vmem>>, %arg8: memref<4x16xf32, #tpu.memory_space<vmem>>, %arg9: memref<1x16xf32, #tpu.memory_space<vmem>>, %arg10: memref<16x16xf32, #tpu.memory_space<vmem>>, %arg11: memref<1x16xf32, #tpu.memory_space<vmem>>, %arg12: memref<16x128xf32, #tpu.memory_space<vmem>>, %arg13: memref<16x128xf32, #tpu.memory_space<vmem>>, %arg14: memref<128x128xf32, #tpu.memory_space<vmem>>, %arg15: memref<1x128xf32, #tpu.memory_space<vmem>>, %arg16: memref<16x128xf32, #tpu.memory_space<vmem>>, %arg17: memref<2x128xf32, #tpu.memory_space<vmem>>) attributes {dimension_semantics = [], scalar_prefetch = 0 : i64, scratch_operands = 0 : i64, tpu.core_type = #tpu.core_type<tc>} {
    %c0 = arith.constant 0 : index
    %c0_0 = arith.constant 0 : index
    %0 = vector.load %arg0[%c0, %c0_0] : memref<2x64xf32, #tpu.memory_space<vmem>>, vector<2x64xf32>
    %c0_1 = arith.constant 0 : index
    %c0_2 = arith.constant 0 : index
    %1 = vector.load %arg3[%c0_1, %c0_2] : memref<64x32xf32, #tpu.memory_space<vmem>>, vector<64x32xf32>
    %cst = arith.constant dense<0.000000e+00> : vector<2x32xf32>
    %2 = tpu.matmul %0, %1, %cst {dimension_numbers = #tpu.dot_dimension_numbers<[1], [0], [0], [1], [0, 0, 1, 1], [], []>} : vector<2x64xf32>, vector<64x32xf32>, vector<2x32xf32> -> vector<2x32xf32>
    %c0_3 = arith.constant 0 : index
    %c0_4 = arith.constant 0 : index
    %3 = vector.load %arg4[%c0_3, %c0_4] : memref<1x32xf32, #tpu.memory_space<vmem>>, vector<1x32xf32>
    %4 = vector.broadcast %3 : vector<1x32xf32> to vector<2x32xf32>
    %5 = arith.addf %2, %4 : vector<2x32xf32>
    %cst_5 = arith.constant 0.000000e+00 : f32
    %6 = vector.broadcast %cst_5 : f32 to vector<2x32xf32>
    %7 = arith.maximumf %5, %6 : vector<2x32xf32>
    %c0_6 = arith.constant 0 : index
    %c0_7 = arith.constant 0 : index
    %8 = vector.load %arg5[%c0_6, %c0_7] : memref<32x16xf32, #tpu.memory_space<vmem>>, vector<32x16xf32>
    %cst_8 = arith.constant dense<0.000000e+00> : vector<2x16xf32>
    %9 = tpu.matmul %7, %8, %cst_8 {dimension_numbers = #tpu.dot_dimension_numbers<[1], [0], [0], [1], [0, 0, 1, 1], [], []>} : vector<2x32xf32>, vector<32x16xf32>, vector<2x16xf32> -> vector<2x16xf32>
    %c0_9 = arith.constant 0 : index
    %c0_10 = arith.constant 0 : index
    %10 = vector.load %arg6[%c0_9, %c0_10] : memref<1x16xf32, #tpu.memory_space<vmem>>, vector<1x16xf32>
    %11 = vector.broadcast %10 : vector<1x16xf32> to vector<2x16xf32>
    %12 = arith.addf %9, %11 : vector<2x16xf32>
    %13 = vector.extract_strided_slice %12 {offsets = [0, 0], sizes = [2, 8], strides = [1, 1]} : vector<2x16xf32> to vector<2x8xf32>
    %14 = vector.extract_strided_slice %12 {offsets = [0, 8], sizes = [2, 8], strides = [1, 1]} : vector<2x16xf32> to vector<2x8xf32>
    %c0_11 = arith.constant 0 : index
    %c0_12 = arith.constant 0 : index
    %15 = vector.load %arg2[%c0_11, %c0_12] : memref<2x8xf32, #tpu.memory_space<vmem>>, vector<2x8xf32>
    %cst_13 = arith.constant 5.000000e-01 : f32
    %16 = vector.broadcast %cst_13 : f32 to vector<2x8xf32>
    %17 = arith.mulf %16, %14 : vector<2x8xf32>
    %18 = math.exp %17 : vector<2x8xf32>
    %19 = arith.mulf %15, %18 : vector<2x8xf32>
    %20 = arith.addf %13, %19 : vector<2x8xf32>
    %c0_14 = arith.constant 0 : index
    %c0_15 = arith.constant 0 : index
    %21 = vector.load %arg7[%c0_14, %c0_15] : memref<8x16xf32, #tpu.memory_space<vmem>>, vector<8x16xf32>
    %cst_16 = arith.constant dense<0.000000e+00> : vector<2x16xf32>
    %22 = tpu.matmul %20, %21, %cst_16 {dimension_numbers = #tpu.dot_dimension_numbers<[1], [0], [0], [1], [0, 0, 1, 1], [], []>} : vector<2x8xf32>, vector<8x16xf32>, vector<2x16xf32> -> vector<2x16xf32>
    %c0_17 = arith.constant 0 : index
    %c0_18 = arith.constant 0 : index
    %23 = vector.load %arg1[%c0_17, %c0_18] : memref<2x4xf32, #tpu.memory_space<vmem>>, vector<2x4xf32>
    %c0_19 = arith.constant 0 : index
    %c0_20 = arith.constant 0 : index
    %24 = vector.load %arg8[%c0_19, %c0_20] : memref<4x16xf32, #tpu.memory_space<vmem>>, vector<4x16xf32>
    %cst_21 = arith.constant dense<0.000000e+00> : vector<2x16xf32>
    %25 = tpu.matmul %23, %24, %cst_21 {dimension_numbers = #tpu.dot_dimension_numbers<[1], [0], [0], [1], [0, 0, 1, 1], [], []>} : vector<2x4xf32>, vector<4x16xf32>, vector<2x16xf32> -> vector<2x16xf32>
    %26 = arith.addf %22, %25 : vector<2x16xf32>
    %c0_22 = arith.constant 0 : index
    %c0_23 = arith.constant 0 : index
    %27 = vector.load %arg9[%c0_22, %c0_23] : memref<1x16xf32, #tpu.memory_space<vmem>>, vector<1x16xf32>
    %28 = vector.broadcast %27 : vector<1x16xf32> to vector<2x16xf32>
    %29 = arith.addf %26, %28 : vector<2x16xf32>
    %30 = arith.negf %29 : vector<2x16xf32>
    %31 = math.exp %30 : vector<2x16xf32>
    %cst_24 = arith.constant 1.000000e+00 : f32
    %32 = vector.broadcast %cst_24 : f32 to vector<2x16xf32>
    %33 = arith.addf %32, %31 : vector<2x16xf32>
    %34 = arith.divf %32, %33 : vector<2x16xf32>
    %c0_25 = arith.constant 0 : index
    %c0_26 = arith.constant 0 : index
    %35 = vector.load %arg10[%c0_25, %c0_26] : memref<16x16xf32, #tpu.memory_space<vmem>>, vector<16x16xf32>
    %cst_27 = arith.constant dense<0.000000e+00> : vector<2x16xf32>
    %36 = tpu.matmul %34, %35, %cst_27 {dimension_numbers = #tpu.dot_dimension_numbers<[1], [0], [0], [1], [0, 0, 1, 1], [], []>} : vector<2x16xf32>, vector<16x16xf32>, vector<2x16xf32> -> vector<2x16xf32>
    %c0_28 = arith.constant 0 : index
    %c0_29 = arith.constant 0 : index
    %37 = vector.load %arg11[%c0_28, %c0_29] : memref<1x16xf32, #tpu.memory_space<vmem>>, vector<1x16xf32>
    %38 = vector.broadcast %37 : vector<1x16xf32> to vector<2x16xf32>
    %39 = arith.addf %36, %38 : vector<2x16xf32>
    %40 = arith.negf %39 : vector<2x16xf32>
    %41 = math.exp %40 : vector<2x16xf32>
    %cst_30 = arith.constant 1.000000e+00 : f32
    %42 = vector.broadcast %cst_30 : f32 to vector<2x16xf32>
    %43 = arith.addf %42, %41 : vector<2x16xf32>
    %44 = arith.divf %42, %43 : vector<2x16xf32>
    %c0_31 = arith.constant 0 : index
    %c0_32 = arith.constant 0 : index
    %45 = vector.load %arg12[%c0_31, %c0_32] : memref<16x128xf32, #tpu.memory_space<vmem>>, vector<16x128xf32>
    %cst_33 = arith.constant dense<0.000000e+00> : vector<2x128xf32>
    %46 = tpu.matmul %44, %45, %cst_33 {dimension_numbers = #tpu.dot_dimension_numbers<[1], [0], [0], [1], [0, 0, 1, 1], [], []>} : vector<2x16xf32>, vector<16x128xf32>, vector<2x128xf32> -> vector<2x128xf32>
    %c0_34 = arith.constant 0 : index
    %c0_35 = arith.constant 0 : index
    %47 = vector.load %arg13[%c0_34, %c0_35] : memref<16x128xf32, #tpu.memory_space<vmem>>, vector<16x128xf32>
    %cst_36 = arith.constant dense<0.000000e+00> : vector<2x128xf32>
    %48 = tpu.matmul %44, %47, %cst_36 {dimension_numbers = #tpu.dot_dimension_numbers<[1], [0], [0], [1], [0, 0, 1, 1], [], []>} : vector<2x16xf32>, vector<16x128xf32>, vector<2x128xf32> -> vector<2x128xf32>
    %49 = arith.mulf %46, %48 : vector<2x128xf32>
    %c0_37 = arith.constant 0 : index
    %c0_38 = arith.constant 0 : index
    %50 = vector.load %arg14[%c0_37, %c0_38] : memref<128x128xf32, #tpu.memory_space<vmem>>, vector<128x128xf32>
    %cst_39 = arith.constant dense<0.000000e+00> : vector<2x128xf32>
    %51 = tpu.matmul %49, %50, %cst_39 {dimension_numbers = #tpu.dot_dimension_numbers<[1], [0], [0], [1], [0, 0, 1, 1], [], []>} : vector<2x128xf32>, vector<128x128xf32>, vector<2x128xf32> -> vector<2x128xf32>
    %c0_40 = arith.constant 0 : index
    %c0_41 = arith.constant 0 : index
    %52 = vector.load %arg15[%c0_40, %c0_41] : memref<1x128xf32, #tpu.memory_space<vmem>>, vector<1x128xf32>
    %53 = vector.broadcast %52 : vector<1x128xf32> to vector<2x128xf32>
    %54 = arith.addf %51, %53 : vector<2x128xf32>
    %c0_42 = arith.constant 0 : index
    %c0_43 = arith.constant 0 : index
    %55 = vector.load %arg16[%c0_42, %c0_43] : memref<16x128xf32, #tpu.memory_space<vmem>>, vector<16x128xf32>
    %cst_44 = arith.constant dense<0.000000e+00> : vector<2x128xf32>
    %56 = tpu.matmul %12, %55, %cst_44 {dimension_numbers = #tpu.dot_dimension_numbers<[1], [0], [0], [1], [0, 0, 1, 1], [], []>} : vector<2x16xf32>, vector<16x128xf32>, vector<2x128xf32> -> vector<2x128xf32>
    %57 = tpu.iota {dimensions = array<i32: 1>} : vector<2x128xi32>
    %c64_i32 = arith.constant 64 : i32
    %58 = vector.broadcast %c64_i32 : i32 to vector<2x128xi32>
    %59 = arith.cmpi slt, %57, %58 : vector<2x128xi32>
    %60 = math.exp %54 : vector<2x128xf32>
    %61 = arith.select %59, %60, %56 : vector<2x128xi1>, vector<2x128xf32>
    %c0_45 = arith.constant 0 : index
    %c0_46 = arith.constant 0 : index
    %62 = vector.load %arg17[%c0_45, %c0_46] : memref<2x128xf32, #tpu.memory_space<vmem>>, vector<2x128xf32>
    tpu.vector_store %arg17[%c0_45, %c0_46], %61 {strides = array<i32>} : memref<2x128xf32, #tpu.memory_space<vmem>>, vector<2x128xf32>,
    return
  }
}

</mosaic_0001>

<bundles_post_ra>
// kernel: tpu_custom_call.1
= control target key start
LH: loop header
LB: loop body
LE: loop exit
PB: predicated region body
PF: predicated region fallthrough
CT: control target
= control target key end

     0   :  { %s703_s0 = inlined_call_operand.vmem [shape: f32[2,64], index: 0, kind: input, shape index: {}]   ;;  %s704_s1 = inlined_call_operand.vmem [shape: f32[2,4], index: 1, kind: input, shape index: {}]   ;;  %s705_s2 = inlined_call_operand.vmem [shape: f32[2,8], index: 2, kind: input, shape index: {}]   ;;  %s706_s3 = inlined_call_operand.vmem [shape: f32[64,32], index: 3, kind: input, shape index: {}]   ;;  %s707_s4 = inlined_call_operand.vmem [shape: f32[1,32], index: 4, kind: input, shape index: {}]   ;;  %s708_s5 = inlined_call_operand.vmem [shape: f32[32,16], index: 5, kind: input, shape index: {}]   ;;  %s709_s6 = inlined_call_operand.vmem [shape: f32[1,16], index: 6, kind: input, shape index: {}]   ;;  %s710_s7 = inlined_call_operand.vmem [shape: f32[8,16], index: 7, kind: input, shape index: {}]   ;;  %s711_s8 = inlined_call_operand.vmem [shape: f32[4,16], index: 8, kind: input, shape index: {}]   ;;  %s712_s9 = inlined_call_operand.vmem [shape: f32[1,16], index: 9, kind: input, shape index: {}]   ;;  %s713_s10 = inlined_call_operand.vmem [shape: f32[16,16], index: 10, kind: input, shape index: {}]   ;;  %s714_s11 = inlined_call_operand.vmem [shape: f32[1,16], index: 11, kind: input, shape index: {}]   ;;  %s715_s12 = inlined_call_operand.vmem [shape: f32[16,128], index: 12, kind: input, shape index: {}]   ;;  %s716_s13 = inlined_call_operand.vmem [shape: f32[16,128], index: 13, kind: input, shape index: {}]   ;;  %s717_s14 = inlined_call_operand.hbm [shape: f32[128,128], index: 14, kind: input, shape index: {}]   ;;  %s718_s15 = inlined_call_operand.vmem [shape: f32[1,128], index: 15, kind: input, shape index: {}]   ;;  %s719_s16 = inlined_call_operand.vmem [shape: f32[16,128], index: 16, kind: input, shape index: {}]   ;;  %s720_s17 = inlined_call_operand.hbm [shape: f32[2,128], index: 17, kind: output, shape index: {}]  }
   0x1   :  { %721 = sst [smem:[#allocation8_spill]] %s703_s0 }
   0x2   :  { %722 = sst [smem:[#allocation9_spill]] %s704_s1 }
   0x3   :  { %22 = vsyncpa [#allocation3], 0 }
   0x4   :  { %23 = vsyncpa [#allocation4], 0  ;;  %s56_s26 = sshll.u32 %s717_s14, 4  ;;  %s503_s27 = smov [#allocation2]   ;;  %s57_s26 = int_to_ptr.hbm [resolvable:$true] %s56_s26 }
   0x5   :  { %s58_s28 = sshll.u32 %s503_s27, 4  ;;  %s504_s29 = smov 128   ;;  %s59_s28 = int_to_ptr.vmem [resolvable:$true] %s58_s28 }
   0x6   :  { %s505_s0 = smov 8  }
   0x7   :  { %64 = dma.hbm_to_vmem [thread:$0]  %s57_s26, 2048, %s59_s28, [#allocation3], %s504_s29, %s504_s29, %s505_s0  }
   0x8   :  { %499 = dma.done.wait [#allocation3], 2048  }
   0x9   :  { %500 = vsyncadd [#allocation3], 4294965248  ;;  %v81_v0 = vld [vmem:[%s706_s3 + $0x38] sm:$0xff]  ;;  %v80_v1 = vld [vmem:[%s706_s3 + $0x30] sm:$0xff]  ;;  %s723_s20 = sld [smem:[#allocation8_spill]]  ;;  %vm86_vm0 = vcmask 523264  }
   0xa   :  { %98 = vmatpush.msra.mxu0 %v81_v0  ;;  %v79_v2 = vld [vmem:[%s706_s3 + $0x28] sm:$0xff]  ;;  %v78_v3 = vld [vmem:[%s706_s3 + $0x20] sm:$0xff]  ;;  %v114_v4 = vld [vmem:[%s708_s5 + $0x18] sm:$0xff]  ;;  %vm119_vm1 = vcmask 261120   ;;  %vm160_vm2 = vcmask 1043456   ;;  %s724_s19 = sld [smem:[#allocation9_spill]] }
   0xb   :  { %135 = vmatpush.msra.mxu1 %v114_v4  ;;  %v77_v5 = vld [vmem:[%s706_s3 + $0x18] sm:$0xff]  ;;  %v76_v6 = vld [vmem:[%s706_s3 + $0x10] sm:$0xff]  ;;  %v75_v7 = vld [vmem:[%s706_s3 + $0x8] sm:$0xff]  ;;  %vm156_vm3 = vcmask 31744   ;;  %vm184_vm4 = vcmask 64512   ;;  %vm238_vm8 = vcmask 130048  }
   0xc   :  { %99 = vmatpush.msra.mxu0 %v80_v1  ;;  %v74_v8 = vld [vmem:[%s706_s3] sm:$0xff]  ;;  %v113_v10 = vld [vmem:[%s708_s5 + $0x10] sm:$0xff]  ;;  %v112_v11 = vld [vmem:[%s708_s5 + $0x8] sm:$0xff] }
   0xd   :  { %136 = vmatpush.msra.mxu1 %v113_v10  ;;  %v111_v12 = vld [vmem:[%s708_s5] sm:$0xff]  ;;  %s506_s5 = smov 120   ;;  %v233_v30 = vld [vmem:[%s713_s10 + $0x8] sm:$0xff]  ;;  %v344_v60 = vld [vmem:[#allocation2 + $0x78] sm:$0xff] }
   0xe   :  { %100 = vmatpush.msra.mxu0 %v79_v2  ;;  %v434_v13 = vld [vmem:[%s707_s4] ss:$0 sm:$0xff]  ;;  %v282_v50 = vld [vmem:[%s715_s12 + $0x8] sm:$0xff]  ;;  %v343_v61 = vld [vmem:[#allocation2 + $0x70] sm:$0xff]  ;;  %349 = vmatpush.msra.mxu2 %v344_v60 }
   0xf   :  { %v73_v9 = vld [vmem:[%s723_s20] sm:$0x3]  ;;  %137 = vmatpush.msra.mxu1 %v112_v11  ;;  %v307_v52 = vld [vmem:[%s716_s13 + $0x8] sm:$0xff]  ;;  %v340_v2 = vld [vmem:[#allocation2 + $0x58] sm:$0xff] }
  0x10   :  { %101 = vmatpush.msra.mxu0 %v78_v3  ;;  %v435_v17 = vld [vmem:[%s709_s6] ss:$0 sm:$0xff]  ;;  %v370_v55 = vld [vmem:[%s719_s16 + $0x8] sm:$0xff]  ;;  %350 = vmatpush.msra.mxu2 %v343_v61  ;;  %v339_v3 = vld [vmem:[#allocation2 + $0x50] sm:$0xff] }
  0x11   :  { %138 = vmatpush.msra.mxu1 %v111_v12  ;;  %v155_v23 = vld [vmem:[%s711_s8] sm:$0xf]  ;;  %v342_v62 = vld [vmem:[#allocation2 + $0x68] sm:$0xff]  ;;  %v335_v10 = vld [vmem:[#allocation2 + $0x30] sm:$0xff] }
  0x12   :  { %102 = vmatpush.msra.mxu0 %v77_v5  ;;  %v153_v24 = vld [vmem:[%s710_s7] sm:$0xff]  ;;  %351 = vmatpush.msra.mxu2 %v342_v62  ;;  %v338_v4 = vld [vmem:[#allocation2 + $0x48] sm:$0xff] }
  0x13   :  { %420 = vmatpush.msk.msrb.mxu1 %vm160_vm2, %v155_v23  ;;  %203 = vmatpush.msra.mxu3 %v153_v24  ;;  %v154_v25 = vld [vmem:[%s724_s19] sm:$0x3]  ;;  %v330_v23 = vld [vmem:[#allocation2 + $0x8] sm:$0xff]  ;;  %s408_s19 = sshll.u32 %s720_s17, 4  ;;  %s409_s19 = int_to_ptr.hbm [resolvable:$true] %s408_s19 }
  0x14   :  { %103 = vmatpush.msra.mxu0 %v76_v6  ;;  %v143_v26 = vld [vmem:[%s705_s2] sm:$0x3] }
  0x15   :  { %v232_v31 = vld [vmem:[%s713_s10] sm:$0xff]  ;;  %300 = vmatpush.msrb.mxu3 %v282_v50 }
  0x16   :  { %104 = vmatpush.msra.mxu0 %v75_v7  ;;  %v436_v33 = vld [vmem:[%s712_s9] ss:$0 sm:$0xff] }
  0x17   :  { %v281_v51 = vld [vmem:[%s715_s12] sm:$0xff] }
  0x18   :  { %105 = vmatpush.msra.mxu0 %v74_v8  ;;  %v306_v53 = vld [vmem:[%s716_s13] sm:$0xff]  ;;  %301 = vmatpush.msrb.mxu3 %v281_v51  ;;  %v336_v8 = vld [vmem:[#allocation2 + $0x38] sm:$0xff] }
  0x19   :  { %418 = vmatmul.msk.f32.vlgmr.msra.gmra.mxu0 %vm86_vm0, %v73_v9  ;;  %v437_v54 = vld [vmem:[%s714_s11] ss:$0 sm:$0xff] }
  0x1a   :  { %256 = vmatpush.msrb.mxu0 %v233_v30  ;;  %v369_v56 = vld [vmem:[%s719_s16] sm:$0xff]  ;;  %v394_v30 = vlaneseq  ;;  %s507_s16 = smov [#allocation5]  }
  0x1b   :  { %v341_v0 = vld [vmem:[#allocation2 + $0x60] sm:$0xff]  ;;  %s406_s30 = sshll.u32 %s507_s16, 4  ;;  %s407_s30 = int_to_ptr.vmem [resolvable:$true] %s406_s30 }
  0x1c   :  { %257 = vmatpush.msrb.mxu0 %v232_v31  ;;  %352 = vmatpush.msra.mxu2 %v341_v0  ;;  %v337_v5 = vld [vmem:[#allocation2 + $0x40] sm:$0xff] }
  0x1d   :  { %v329_v24 = vld [vmem:[#allocation2] sm:$0xff] }
  0x1e   :  { %353 = vmatpush.msra.mxu2 %v340_v2 }
  0x20   :  { %354 = vmatpush.msra.mxu2 %v339_v3 }
  0x22   :  { %355 = vmatpush.msra.mxu2 %v338_v4 }
  0x24   :  { %356 = vmatpush.msra.mxu2 %v337_v5 }
  0x26   :  { %357 = vmatpush.msra.mxu2 %v336_v8 }
  0x28   :  { %358 = vmatpush.msra.mxu2 %v335_v10 }
  0x96   :  { %v107_v14 = vpop.f32.mrf.mxu0 }
  0x97   :  { %v108_v15 = vadd.f32 %v434_v13, %v107_v14  ;;  %v334_v14 = vld [vmem:[#allocation2 + $0x28] sm:$0xff] }
  0x98   :  { %359 = vmatpush.msra.mxu2 %v334_v14 }
  0x99   :  { %v110_v16 = vmax.f32 %v108_v15, 0.0 }
  0x9b   :  { %419 = vmatmul.msk.f32.vlgmr.msra.gmra.mxu1 %vm119_vm1, %v110_v16 }
  0x9c   :  { %322 = vmatpush.msra.mxu1 %v307_v52 }
  0x9e   :  { %323 = vmatpush.msra.mxu1 %v306_v53 }
  0xa3   :  { %421 = vmatmul.msk.f32.vlgmr.msrb.gmra.mxu1 %vm156_vm3, %v154_v25 }
 0x118   :  { %v140_v18 = vpop.f32.mrf.mxu1 }
 0x119   :  { %v646_v19 = vadd.f32 %v435_v17, %v140_v18 }
 0x11b   :  { %v144_v20 = vmul.f32 0.5, %v646_v19 }
 0x11d   :  { %v145_v21 = vmul.f32 1.442695, %v144_v20  ;;  %v333_v20 = vld [vmem:[#allocation2 + $0x20] sm:$0xff] }
 0x11e   :  { %360 = vmatpush.msra.mxu2 %v333_v20 }
 0x11f   :  { %439 = vpow2.f32 %v145_v21  ;;  %v332_v21 = vld [vmem:[#allocation2 + $0x18] sm:$0xff] }
 0x120   :  { %v181_v32 = vpop.f32.mrf.mxu1  ;;  %361 = vmatpush.msra.mxu2 %v332_v21 }
 0x125   :  { %v440_v22 = vpop.eup %439 }
 0x126   :  { %148 = vrot.lane.b32.xlu0 %v440_v22, %s506_s5  ;;  %v331_v22 = vld [vmem:[#allocation2 + $0x10] sm:$0xff] }
 0x127   :  { %362 = vmatpush.msra.mxu2 %v331_v22 }
 0x129   :  { %363 = vmatpush.msra.mxu2 %v330_v23 }
 0x12b   :  { %364 = vmatpush.msra.mxu2 %v329_v24 }
 0x198   :  { %v149_v27 = vpop.permute.xlu0 %148 }
 0x199   :  { %v151_v28 = vmul.f32 %v149_v27, %v143_v26 }
 0x19b   :  { %v152_v29 = vadd.f32 %v151_v28, %v646_v19  ;;  %v438_v28 = vld [vmem:[%s718_s15] ss:$0 sm:$0xff] }
 0x19d   :  { %422 = vmatmul.msk.f32.vlgmr.msra.gmra.mxu3 %vm184_vm4, %v152_v29 }
 0x19e   :  { %388 = vmatpush.msra.mxu3 %v370_v55 }
 0x1a0   :  { %389 = vmatpush.msra.mxu3 %v369_v56 }
 0x220   :  { %v205_v34 = vpop.f32.mrf.mxu3 }
 0x221   :  { %v206_v35 = vadd.f32 %v205_v34, %v181_v32  ;;  %v395_v32 = vand.u32 127, %v394_v30 }
 0x223   :  { %v212_v36 = vadd.f32 %v436_v33, %v206_v35  ;;  %vm396_vm14 = vcmp.lt.s32.totalorder %v395_v32, 64 }
 0x225   :  { %v423_v37 = vmul.f32 -1.442695, %v212_v36 }
 0x227   :  { %441 = vpow2.f32 %v423_v37 }
 0x22d   :  { %v442_v38 = vpop.eup %441 }
 0x22e   :  { %v216_v39 = vadd.f32 1.0, %v442_v38 }
 0x230   :  { %443 = vrcp.f32 %v216_v39  ;;  %v228_v43 = vand.u32 2147483648, %v216_v39  ;;  %v226_v45 = vand.u32 2147483647, %v216_v39  ;;  %vm222_vm6 = vweird.f32 %v216_v39 }
 0x232   :  { %v229_v47 = vor.u32 1.1754944e-38, %v228_v43  ;;  %vm227_vm9 = vcmp.eq.f32.partialorder %v226_v45, 8.507059e+37 }
 0x236   :  { %v444_v40 = vpop.eup %443 }
 0x237   :  { %v218_v41 = vmul.f32 %v444_v40, %v216_v39  ;;  %vm223_vm5 = vweird.f32 %v444_v40 }
 0x238   :  { %vm224_vm7 = vmor %vm222_vm6, %vm223_vm5 }
 0x239   :  { %v219_v42 = vsub.f32 1.0, %v218_v41 }
 0x23b   :  { %v220_v44 = vmul.f32 %v444_v40, %v219_v42 }
 0x23d   :  { %v221_v46 = vadd.f32 %v444_v40, %v220_v44 }
 0x23f   :  { %v225_v48 = vsel %vm224_vm7, %v444_v40, %v221_v46 }
 0x240   :  { %v230_v49 = vsel %vm227_vm9, %v229_v47, %v225_v48 }
 0x241   :  { %424 = vmatmul.msk.f32.vlgmr.msrb.gmra.mxu0 %vm238_vm8, %v230_v49 }
 0x2be   :  { %v259_v57 = vpop.f32.mrf.mxu0 }
 0x2bf   :  { %v260_v58 = vadd.f32 %v437_v54, %v259_v57 }
 0x2c1   :  { %v425_v59 = vmul.f32 -1.442695, %v260_v58 }
 0x2c3   :  { %445 = vpow2.f32 %v425_v59 }
 0x2c9   :  { %v446_v63 = vpop.eup %445 }
 0x2ca   :  { %v265_v1 = vadd.f32 1.0, %v446_v63 }
 0x2cc   :  { %447 = vrcp.f32 %v265_v1  ;;  %v277_v11 = vand.u32 2147483648, %v265_v1  ;;  %v275_v13 = vand.u32 2147483647, %v265_v1  ;;  %vm271_vm11 = vweird.f32 %v265_v1 }
 0x2ce   :  { %v278_v16 = vor.u32 1.1754944e-38, %v277_v11  ;;  %vm276_vm13 = vcmp.eq.f32.partialorder %v275_v13, 8.507059e+37 }
 0x2d2   :  { %v448_v6 = vpop.eup %447 }
 0x2d3   :  { %v267_v7 = vmul.f32 %v448_v6, %v265_v1  ;;  %vm272_vm10 = vweird.f32 %v448_v6 }
 0x2d4   :  { %vm273_vm12 = vmor %vm271_vm11, %vm272_vm10 }
 0x2d5   :  { %v268_v9 = vsub.f32 1.0, %v267_v7 }
 0x2d7   :  { %v269_v12 = vmul.f32 %v448_v6, %v268_v9 }
 0x2d9   :  { %v270_v15 = vadd.f32 %v448_v6, %v269_v12 }
 0x2db   :  { %v274_v17 = vsel %vm273_vm12, %v448_v6, %v270_v15 }
 0x2dc   :  { %v279_v18 = vsel %vm276_vm13, %v278_v16, %v274_v17 }
 0x2dd   :  { %426 = vmatmul.msk.f32.vlgmr.msrb.gmra.mxu3 %vm238_vm8, %v279_v18  ;;  %427 = vmatmul.msk.f32.vlgmr.msra.gmra.mxu1 %vm238_vm8, %v279_v18 }
 0x2e5   :  { %428 = vmatmul.msk.f32.vlgmr.msra.gmra.mxu3 %vm238_vm8, %v646_v19 }
 0x35a   :  { %v325_v25 = vpop.f32.mrf.mxu1 }
 0x360   :  { %v303_v26 = vpop.f32.mrf.mxu3 }
 0x361   :  { %v328_v27 = vmul.f32 %v325_v25, %v303_v26 }
 0x363   :  { %365 = vmatmul.f32.vlgmr.msra.gmra.mxu2 %v328_v27 }
 0x368   :  { %v391_v34 = vpop.f32.mrf.mxu3 }
 0x3e6   :  { %v366_v29 = vpop.f32.mrf.mxu2 }
 0x3e7   :  { %v367_v19 = vadd.f32 %v438_v28, %v366_v29 }
 0x3e9   :  { %v397_v31 = vmul.f32 1.442695, %v367_v19 }
 0x3eb   :  { %449 = vpow2.f32 %v397_v31 }
 0x3f1   :  { %v450_v33 = vpop.eup %449 }
 0x3f2   :  { %v399_v35 = vsel %vm396_vm14, %v450_v33, %v391_v34 }
 0x3f3   :  { %400 = vst [vmem:[#allocation5] sm:$0x3] %v399_v35 }
 0x3f4   :  { %411 = dma.vmem_to_hbm [thread:$0]  %s407_s30, 32, %s409_s19, [#allocation4]  }
 0x3f5   :  { %501 = dma.done.wait [#allocation4], 32  }
 0x3f6   :  { %502 = vsyncadd [#allocation4], 4294967264 }
 0x3f7   :  { %416 = vsyncpa [#allocation3], 1 }
 0x3f8   :  { %417 = vsyncpa [#allocation4], 1 }

</bundles_post_ra>
